<compile_context>
chip_gen: v7x
topology: tpu7x:2x2x1
jax: 0.10.0
libtpu: 0.0.40
codegen_flags: <defaults>
</compile_context>

<pallas_src>
import functools

import jax
import jax.numpy as jnp
from jax import lax
from jax.experimental import pallas as pl
from jax.experimental.pallas import tpu as pltpu


def _sdpa_kernel(*refs, scale_factor, dropout_p, keep_threshold_u32):
    if dropout_p > 0.0:
        seed_ref, q_ref, k_ref, v_ref, o_ref = refs
    else:
        q_ref, k_ref, v_ref, o_ref = refs

    # Whole problem resident in VMEM: (B, S, D) tiles.
    q = q_ref[...].astype(jnp.float32) * jnp.float32(scale_factor)   # (B, S, D)
    k = k_ref[...].astype(jnp.float32)                               # (B, S, D)
    v = v_ref[...].astype(jnp.float32)                               # (B, S, D)

    # scores = (q * scale) @ k^T, batched over B; contract dim 2 of both
    # operands so the MXU consumes k directly (no XLU transpose).
    qk = lax.dot_general(q, k, (((2,), (2,)), ((0,), (0,))),
                         preferred_element_type=jnp.float32)         # (B, S, S)

    # Numerically-stable softmax numerator; denominator folded in after attn@v.
    m = jnp.max(qk, axis=-1, keepdims=True)
    e = jnp.exp(qk - m)                                              # (B, S, S)
    l = jnp.sum(e, axis=-1, keepdims=True)                           # (B, S, 1)

    if dropout_p > 0.0:
        # Inverted dropout on the unnormalized probabilities: keep iff
        # uint32 bits >= uint32(p * 2^32)  <=>  uniform[0,1) >= p.
        pltpu.prng_seed(seed_ref[0])
        bits = pltpu.bitcast(pltpu.prng_random_bits(e.shape), jnp.uint32)
        keep = bits >= jnp.uint32(keep_threshold_u32)
        e = jnp.where(keep, e, 0.0)

    # out = e @ v (batched), then fold in 1/row_sum (and dropout 1/(1-p)).
    out = lax.dot_general(e, v, (((2,), (1,)), ((0,), (0,))),
                          preferred_element_type=jnp.float32)        # (B, S, D)
    inv_l = pl.reciprocal(l, approx=True)                            # EUP slot
    if dropout_p > 0.0:
        inv_l = inv_l * jnp.float32(1.0 / (1.0 - dropout_p))
    # NOTE: D=10 << 128 means this is a masked partial store either way at this
    # toy size; lane-dense repacking would only pay off at realistic D.
    o_ref[...] = (out * inv_l).astype(o_ref.dtype)


def sdpa_pallas(query, key, value, *, scale_factor, dropout_p=0.0, seed=0):
    B, S, D = query.shape
    assert key.shape == (B, S, D) and value.shape == (B, S, D)

    dropout_p = float(dropout_p)
    keep_threshold_u32 = min(int(dropout_p * (2 ** 32)), 2 ** 32 - 1)

    kernel = functools.partial(
        _sdpa_kernel,
        scale_factor=float(scale_factor),
        dropout_p=dropout_p,
        keep_threshold_u32=keep_threshold_u32,
    )

    out_shape = jax.ShapeDtypeStruct((B, S, D), jnp.float32)
    compiler_params = pltpu.CompilerParams(
        dimension_semantics=("parallel",))

    if dropout_p > 0.0:
        # Seed goes through scalar prefetch (SMEM) only when actually needed.
        seed_arr = jnp.array([seed], dtype=jnp.int32)
        grid_spec = pltpu.PrefetchScalarGridSpec(
            num_scalar_prefetch=1,
            grid=(1,),
            in_specs=[pl.BlockSpec((B, S, D), lambda i, s: (0, 0, 0))] * 3,
            out_specs=pl.BlockSpec((B, S, D), lambda i, s: (0, 0, 0)),
        )
        return pl.pallas_call(
            kernel,
            out_shape=out_shape,
            grid_spec=grid_spec,
            compiler_params=compiler_params,
        )(seed_arr, query, key, value)

    # dropout_p == 0: no seed argument, plain single-step grid, whole-array blocks
    # (block shape equals the full array, so the (8,128) divisibility rule is waived).
    block = pl.BlockSpec((B, S, D), lambda i: (0, 0, 0))
    return pl.pallas_call(
        kernel,
        out_shape=out_shape,
        grid=(1,),
        in_specs=[block, block, block],
        out_specs=block,
        compiler_params=compiler_params,
    )(query, key, value)


def sdpa_reference(query, key, value, *, scale_factor):
    qk = jnp.einsum("bqd,bkd->bqk", query, key) * scale_factor
    attn = jax.nn.softmax(qk, axis=-1)
    return jnp.einsum("bqk,bkd->bqd", attn, value)


if __name__ == "__main__":
    rng = jax.random.PRNGKey(0)
    kq, kk, kv = jax.random.split(rng, 3)

    B, S, D = 1, 3, 10  # matches the PyTorch module's (1, 3, 10) inputs
    query = jax.random.normal(kq, (B, S, D), dtype=jnp.float32)
    key = jax.random.normal(kk, (B, S, D), dtype=jnp.float32)
    value = jax.random.normal(kv, (B, S, D), dtype=jnp.float32)

    scale_factor = 0.5
    dropout_p = 0.0  # deterministic path (dropout RNG stream differs from PyTorch anyway)

    out = sdpa_pallas(query, key, value,
                      scale_factor=scale_factor, dropout_p=dropout_p)
    out = jax.block_until_ready(out)

    ref = sdpa_reference(query, key, value, scale_factor=scale_factor)
    assert out.shape == (B, S, D)
    # Tolerance loosened slightly because the softmax denominator uses the EUP
    # approximate reciprocal (pl.reciprocal(..., approx=True)).
    assert jnp.allclose(out, ref, atol=5e-3, rtol=5e-3), "mismatch vs reference"

    print("KERNEL_OK")
</pallas_src>

<mosaic_0001>
module attributes {stable_mosaic.version = 11 : i64} {
  func.func @_sdpa_kernel(%arg0: i32, %arg1: memref<1x3x10xf32, #tpu.memory_space<vmem>>, %arg2: memref<1x3x10xf32, #tpu.memory_space<vmem>>, %arg3: memref<1x3x10xf32, #tpu.memory_space<vmem>>, %arg4: memref<1x3x10xf32, #tpu.memory_space<vmem>>) attributes {dimension_semantics = [#tpu.dimension_semantics<parallel>], iteration_bounds = array<i64: 1>, scalar_prefetch = 0 : i64, scratch_operands = 0 : i64, tpu.core_type = #tpu.core_type<tc>, window_params = [{pipeline_mode = #tpu.pipeline_mode<synchronous>, transform_indices = @transform_0, window_bounds = array<i64: 1, 3, 10>}, {pipeline_mode = #tpu.pipeline_mode<synchronous>, transform_indices = @transform_1, window_bounds = array<i64: 1, 3, 10>}, {pipeline_mode = #tpu.pipeline_mode<synchronous>, transform_indices = @transform_2, window_bounds = array<i64: 1, 3, 10>}, {pipeline_mode = #tpu.pipeline_mode<synchronous>, transform_indices = @transform_3, window_bounds = array<i64: 1, 3, 10>}]} {
    %c0 = arith.constant 0 : index
    %c0_0 = arith.constant 0 : index
    %c0_1 = arith.constant 0 : index
    %0 = vector.load %arg1[%c0, %c0_0, %c0_1] : memref<1x3x10xf32, #tpu.memory_space<vmem>>, vector<1x3x10xf32>
    %cst = arith.constant 5.000000e-01 : f32
    %1 = vector.broadcast %cst : f32 to vector<1x3x10xf32>
    %2 = arith.mulf %0, %1 : vector<1x3x10xf32>
    %c0_2 = arith.constant 0 : index
    %c0_3 = arith.constant 0 : index
    %c0_4 = arith.constant 0 : index
    %3 = vector.load %arg2[%c0_2, %c0_3, %c0_4] : memref<1x3x10xf32, #tpu.memory_space<vmem>>, vector<1x3x10xf32>
    %c0_5 = arith.constant 0 : index
    %c0_6 = arith.constant 0 : index
    %c0_7 = arith.constant 0 : index
    %4 = vector.load %arg3[%c0_5, %c0_6, %c0_7] : memref<1x3x10xf32, #tpu.memory_space<vmem>>, vector<1x3x10xf32>
    %cst_8 = arith.constant dense<0.000000e+00> : vector<1x3x3xf32>
    %5 = tpu.matmul %2, %3, %cst_8 {dimension_numbers = #tpu.dot_dimension_numbers<[2], [2], [1], [1], [0, 0, 0, 1, 1, 1], [0], [0]>} : vector<1x3x10xf32>, vector<1x3x10xf32>, vector<1x3x3xf32> -> vector<1x3x3xf32>
    %cst_9 = arith.constant dense<0xFF800000> : vector<1x3xf32>
    %6 = vector.multi_reduction <maximumf>, %5, %cst_9 [2] : vector<1x3x3xf32> to vector<1x3xf32>
    %7 = vector.shape_cast %6 : vector<1x3xf32> to vector<1x3x1xf32>
    %8 = vector.broadcast %7 : vector<1x3x1xf32> to vector<1x3x3xf32>
    %9 = arith.subf %5, %8 : vector<1x3x3xf32>
    %10 = math.exp %9 : vector<1x3x3xf32>
    %cst_10 = arith.constant dense<0.000000e+00> : vector<1x3xf32>
    %11 = vector.multi_reduction <add>, %10, %cst_10 [2] : vector<1x3x3xf32> to vector<1x3xf32>
    %12 = vector.shape_cast %11 : vector<1x3xf32> to vector<1x3x1xf32>
    %cst_11 = arith.constant dense<0.000000e+00> : vector<1x3x10xf32>
    %13 = tpu.matmul %10, %4, %cst_11 {dimension_numbers = #tpu.dot_dimension_numbers<[2], [1], [1], [2], [0, 0, 0, 1, 1, 2], [0], [0]>} : vector<1x3x3xf32>, vector<1x3x10xf32>, vector<1x3x10xf32> -> vector<1x3x10xf32>
    %14 = tpu.reciprocal %12 {approx = true} : vector<1x3x1xf32> -> vector<1x3x1xf32>
    %15 = vector.broadcast %14 : vector<1x3x1xf32> to vector<1x3x10xf32>
    %16 = arith.mulf %13, %15 : vector<1x3x10xf32>
    %c0_12 = arith.constant 0 : index
    %c0_13 = arith.constant 0 : index
    %c0_14 = arith.constant 0 : index
    %17 = vector.load %arg4[%c0_12, %c0_13, %c0_14] : memref<1x3x10xf32, #tpu.memory_space<vmem>>, vector<1x3x10xf32>
    tpu.vector_store %arg4[%c0_12, %c0_13, %c0_14], %16 {strides = array<i32>} : memref<1x3x10xf32, #tpu.memory_space<vmem>>, vector<1x3x10xf32>,
    return
  }
  func.func @transform_0(%arg0: i32) -> (i32, i32, i32) {
    %c0_i32 = arith.constant 0 : i32
    %c0_i32_0 = arith.constant 0 : i32
    %c0_i32_1 = arith.constant 0 : i32
    %c0_i32_2 = arith.constant 0 : i32
    return %c0_i32, %c0_i32_0, %c0_i32_1 : i32, i32, i32
  }
  func.func @transform_1(%arg0: i32) -> (i32, i32, i32) {
    %c0_i32 = arith.constant 0 : i32
    %c0_i32_0 = arith.constant 0 : i32
    %c0_i32_1 = arith.constant 0 : i32
    %c0_i32_2 = arith.constant 0 : i32
    return %c0_i32, %c0_i32_0, %c0_i32_1 : i32, i32, i32
  }
  func.func @transform_2(%arg0: i32) -> (i32, i32, i32) {
    %c0_i32 = arith.constant 0 : i32
    %c0_i32_0 = arith.constant 0 : i32
    %c0_i32_1 = arith.constant 0 : i32
    %c0_i32_2 = arith.constant 0 : i32
    return %c0_i32, %c0_i32_0, %c0_i32_1 : i32, i32, i32
  }
  func.func @transform_3(%arg0: i32) -> (i32, i32, i32) {
    %c0_i32 = arith.constant 0 : i32
    %c0_i32_0 = arith.constant 0 : i32
    %c0_i32_1 = arith.constant 0 : i32
    %c0_i32_2 = arith.constant 0 : i32
    return %c0_i32, %c0_i32_0, %c0_i32_1 : i32, i32, i32
  }
}

</mosaic_0001>

<bundles_post_ra>
// kernel: tpu_custom_call.1
= control target key start
LH: loop header
LB: loop body
LE: loop exit
PB: predicated region body
PF: predicated region fallthrough
CT: control target
= control target key end

     0   :  { %vm18_vm0 = vcmask 80896   ;;  %v215_v0 = vmov 0.0   ;;  %vm216_vm1 = vmmov 0   ;;  %vm95_vm2 = vcmask 18432   ;;  %s251_s1 = inlined_call_operand.vmem [shape: f32[1,3,10], index: 1, kind: input, shape index: {}]   ;;  %s252_s0 = inlined_call_operand.vmem [shape: f32[1,3,10], index: 0, kind: input, shape index: {}]   ;;  %s253_s2 = inlined_call_operand.vmem [shape: f32[1,3,10], index: 2, kind: input, shape index: {}]   ;;  %s254_s3 = inlined_call_operand.vmem [shape: f32[1,3,10], index: 3, kind: output, shape index: {}]  }
   0x1   :  { %199 = vmatprep.subr.mxu0 %v215_v0  ;;  %v16_v1 = vld [vmem:[%s251_s1] sm:$0x7]  ;;  %201 = vmatprep.mubr.msk.f32.mxu0 %vm216_vm1, %v215_v0  ;;  %vm109_vm3 = vcmask 1042432   ;;  %vm105_vm4 = vcmask 23552   ;;  %vm185_vm5 = vcmask 75776  }
   0x2   :  { %v14_v2 = vld [vmem:[%s252_s0] sm:$0x7]  ;;  %200 = vmatpush3.xpose.msk.msra.mxu0 %vm18_vm0, %v16_v1  ;;  %204 = vmatprep.subr.mxu1 %v215_v0 }
   0x3   :  { %v15_v3 = vmul.f32 0.5, %v14_v2  ;;  %206 = vmatprep.mubr.msk.f32.mxu1 %vm216_vm1, %v215_v0  ;;  %v17_v7 = vld [vmem:[%s253_s2] sm:$0x7] }
   0x4   :  { %205 = vmatpush3.msk.msra.mxu1 %vm109_vm3, %v17_v7 }
   0x5   :  { %202 = vmatmul.mubr.msk.f32.vlgmr.msra.gmra.mrb[0].mxu0 %vm18_vm0, %v15_v3 }
  0xd8   :  { %v91_v4 = vpop.f32.mrb[0].mxu0 }
  0xd9   :  { %v203_v5 = vpop.f32.mrb[1].mxu0  ;;  %v96_v6 = vsel %vm95_vm2, %v91_v4, -inf }
  0xda   :  { %97 = vmax.xlane.f32.xlu0 %v96_v6 }
 0x167   :  { %v98_v8 = vpop.xlane.xlu0 %97 }
 0x168   :  { %v99_v9 = vsub.f32 %v91_v4, %v98_v8 }
 0x16a   :  { %v100_v10 = vmul.f32 1.442695, %v99_v9 }
 0x16c   :  { %211 = vpow2.f32 %v100_v10 }
 0x176   :  { %v212_v11 = vpop.eup %211 }
 0x177   :  { %207 = vmatmul.mubr.msk.f32.vlgmr.msra.gmra.mrb[0].mxu1 %vm105_vm4, %v212_v11  ;;  %v102_v12 = vsel %vm95_vm2, %v212_v11, 0.0 }
 0x178   :  { %103 = vadd.xlane.f32.xlu0 %v102_v12 }
 0x205   :  { %v104_v13 = vpop.xlane.xlu0 %103 }
 0x206   :  { %213 = vrcp.f32 %v104_v13 }
 0x210   :  { %v214_v14 = vpop.eup %213 }
 0x24a   :  { %v179_v15 = vpop.f32.mrb[0].mxu1 }
 0x24b   :  { %v184_v16 = vmul.f32 %v214_v14, %v179_v15  ;;  %v208_v17 = vpop.f32.mrb[1].mxu1 }
 0x24d   :  { %186 = vst.msk [vmem:[%s254_s3] sm:$0x7] %vm185_vm5, %v184_v16 }

</bundles_post_ra>
